<compile_context>
chip_gen: v6e
topology: v6e:2x2x1
jax: 0.10.0
libtpu: 0.0.40
codegen_flags: <defaults>
</compile_context>

<pallas_src>
import functools

import jax
import jax.numpy as jnp
from jax.experimental import pallas as pl
from jax.experimental.pallas import tpu as pltpu


def _focal_partial_kernel(x_ref, t_ref, out_ref, *, hw, tile):
    # x_ref  : (1, C, TILE)  logits tile (native dtype), classes on sublanes
    # t_ref  : (1, 1, TILE)  int32 targets, lane-dense
    # out_ref: (1, 1, 1)     f32 per-batch partial NLL sum (resident across tiles)
    ti = pl.program_id(1)

    @pl.when(ti == 0)
    def _():
        out_ref[...] = jnp.zeros_like(out_ref)

    x = x_ref[0].astype(jnp.float32)     # (C, T)
    t = t_ref[0]                         # (1, T) int32
    C, T = x.shape

    # numerically stable log-sum-exp over the class (sublane) axis
    m = jnp.max(x, axis=0, keepdims=True)                                # (1, T)
    lse = m + jnp.log(jnp.sum(jnp.exp(x - m), axis=0, keepdims=True))    # (1, T)

    # gather the target-class logit via a sublane one-hot select + reduce
    cls = jax.lax.broadcasted_iota(jnp.int32, (C, T), 0)
    tgt_logit = jnp.sum(jnp.where(cls == t, x, 0.0), axis=0, keepdims=True)  # (1, T)

    nll = lse - tgt_logit                                                # (1, T)

    # mask lanes past the end of the pixel axis (partial last tile)
    pix = ti * tile + jax.lax.broadcasted_iota(jnp.int32, (1, T), 1)
    nll = jnp.where(pix < hw, nll, 0.0)

    # accumulate per-tile partial sum into the per-batch output block
    out_ref[...] += jnp.sum(nll)


def focal_loss(logits_nchw, target_nhw, *, gamma=1.0):
    """FocalLoss forward. logits_nchw: (N,C,H,W) float, target_nhw: (N,H,W) int."""
    N, C, H, W = logits_nchw.shape
    HW = H * W
    M = N * HW

    # Free reshapes only: keep the NCHW memory layout (no transpose).
    x = logits_nchw.reshape(N, C, HW)                 # classes -> sublanes
    t = target_nhw.reshape(N, 1, HW).astype(jnp.int32)  # pixels -> lanes

    # Pixel-tile size: lane extent must be a multiple of 128 or the full axis.
    if HW % 128 == 0:
        tile = min(HW, 32 * 1024)   # ~1 MiB/buffer even with sublane padding
    else:
        tile = HW                   # full axis (small inputs)
    num_tiles = pl.cdiv(HW, tile)

    partial = pl.pallas_call(
        functools.partial(_focal_partial_kernel, hw=HW, tile=tile),
        out_shape=jax.ShapeDtypeStruct((N, 1, 1), jnp.float32),
        grid_spec=pltpu.PrefetchScalarGridSpec(
            num_scalar_prefetch=0,
            grid=(N, num_tiles),
            in_specs=[
                pl.BlockSpec((1, C, tile), lambda n, ti: (n, 0, ti)),
                pl.BlockSpec((1, 1, tile), lambda n, ti: (n, 0, ti)),
            ],
            out_specs=pl.BlockSpec((1, 1, 1), lambda n, ti: (n, 0, 0)),
        ),
        compiler_params=pltpu.CompilerParams(
            # batch axis can shard across TensorCores (v7x); pixel tiles reduce.
            dimension_semantics=("parallel", "arbitrary"),
            vmem_limit_bytes=32 * 1024 * 1024,  # safe on v5e/v6e/v7x; tiles are ~MiB
        ),
    )(x, t)

    # Tiny final combine: CrossEntropy 'mean' reduction + focal transform.
    logp = jnp.sum(partial) / jnp.float32(M)
    p = jnp.exp(-logp)
    return (1.0 - p) ** gamma * logp


if __name__ == "__main__":
    key = jax.random.PRNGKey(0)
    k_logits, k_target = jax.random.split(key)

    N, C, H, W = 2, 4, 16, 16
    logits = jax.random.normal(k_logits, (N, C, H, W), dtype=jnp.float32)
    target = jax.random.randint(k_target, (N, H, W), 0, C, dtype=jnp.int32)

    loss = focal_loss(logits, target, gamma=1.0)
    jax.block_until_ready(loss)

    # pure-JAX reference check (same math, outside Pallas)
    x2d = jnp.transpose(logits, (0, 2, 3, 1)).reshape(-1, C)
    t1d = target.reshape(-1)
    logsm = jax.nn.log_softmax(x2d, axis=-1)
    logp_ref = -jnp.mean(jnp.take_along_axis(logsm, t1d[:, None], axis=-1))
    p_ref = jnp.exp(-logp_ref)
    loss_ref = (1.0 - p_ref) ** 1.0 * logp_ref
    assert jnp.allclose(loss, loss_ref, rtol=1e-5, atol=1e-5), (loss, loss_ref)

    print("KERNEL_OK")
</pallas_src>

<mosaic_0001>
module attributes {stable_mosaic.version = 11 : i64} {
  func.func @_focal_partial_kernel(%arg0: i32, %arg1: i32, %arg2: memref<1x4x256xf32, #tpu.memory_space<vmem>>, %arg3: memref<1x1x256xi32, #tpu.memory_space<vmem>>, %arg4: memref<1x1x1xf32, #tpu.memory_space<vmem>>) attributes {dimension_semantics = [#tpu.dimension_semantics<parallel>, #tpu.dimension_semantics<arbitrary>], iteration_bounds = array<i64: 2, 1>, scalar_prefetch = 0 : i64, scratch_operands = 0 : i64, tpu.core_type = #tpu.core_type<tc>, window_params = [{transform_indices = @transform_0, window_bounds = array<i64: 1, 4, 256>}, {transform_indices = @transform_1, window_bounds = array<i64: 1, 1, 256>}, {transform_indices = @transform_2, window_bounds = array<i64: 1, 1, 1>}]} {
    %c0_i32 = arith.constant 0 : i32
    %0 = arith.cmpi eq, %arg1, %c0_i32 : i32
    %1 = arith.extui %0 : i1 to i32
    %c0_i32_0 = arith.constant 0 : i32
    %2 = arith.cmpi ne, %1, %c0_i32_0 : i32
    scf.if %2 {
      %cst_18 = arith.constant 0.000000e+00 : f32
      %40 = vector.broadcast %cst_18 : f32 to vector<1x1x1xf32>
      %c0_19 = arith.constant 0 : index
      %c0_20 = arith.constant 0 : index
      %c0_21 = arith.constant 0 : index
      %41 = vector.load %arg4[%c0_19, %c0_20, %c0_21] : memref<1x1x1xf32, #tpu.memory_space<vmem>>, vector<1x1x1xf32>
      tpu.vector_store %arg4[%c0_19, %c0_20, %c0_21], %40 {strides = array<i32>} : memref<1x1x1xf32, #tpu.memory_space<vmem>>, vector<1x1x1xf32>,
    } else {
    }
    %c0 = arith.constant 0 : index
    %c0_1 = arith.constant 0 : index
    %c0_2 = arith.constant 0 : index
    %3 = vector.load %arg2[%c0, %c0_1, %c0_2] : memref<1x4x256xf32, #tpu.memory_space<vmem>>, vector<1x4x256xf32>
    %4 = vector.shape_cast %3 : vector<1x4x256xf32> to vector<4x256xf32>
    %c0_3 = arith.constant 0 : index
    %c0_4 = arith.constant 0 : index
    %c0_5 = arith.constant 0 : index
    %5 = vector.load %arg3[%c0_3, %c0_4, %c0_5] : memref<1x1x256xi32, #tpu.memory_space<vmem>>, vector<1x1x256xi32>
    %6 = vector.shape_cast %5 : vector<1x1x256xi32> to vector<1x256xi32>
    %cst = arith.constant dense<0xFF800000> : vector<256xf32>
    %7 = vector.multi_reduction <maximumf>, %4, %cst [0] : vector<4x256xf32> to vector<256xf32>
    %8 = vector.shape_cast %7 : vector<256xf32> to vector<1x256xf32>
    %9 = vector.broadcast %8 : vector<1x256xf32> to vector<4x256xf32>
    %10 = arith.subf %4, %9 : vector<4x256xf32>
    %11 = math.exp %10 : vector<4x256xf32>
    %cst_6 = arith.constant dense<0.000000e+00> : vector<256xf32>
    %12 = vector.multi_reduction <add>, %11, %cst_6 [0] : vector<4x256xf32> to vector<256xf32>
    %13 = vector.shape_cast %12 : vector<256xf32> to vector<1x256xf32>
    %14 = math.log %13 : vector<1x256xf32>
    %15 = arith.addf %8, %14 : vector<1x256xf32>
    %16 = tpu.iota {dimensions = array<i32: 0>} : vector<4x256xi32>
    %17 = vector.broadcast %6 : vector<1x256xi32> to vector<4x256xi32>
    %18 = arith.cmpi eq, %16, %17 : vector<4x256xi32>
    %cst_7 = arith.constant 0.000000e+00 : f32
    %19 = vector.broadcast %cst_7 : f32 to vector<4x256xf32>
    %20 = arith.select %18, %4, %19 : vector<4x256xi1>, vector<4x256xf32>
    %cst_8 = arith.constant dense<0.000000e+00> : vector<256xf32>
    %21 = vector.multi_reduction <add>, %20, %cst_8 [0] : vector<4x256xf32> to vector<256xf32>
    %22 = vector.shape_cast %21 : vector<256xf32> to vector<1x256xf32>
    %23 = arith.subf %15, %22 : vector<1x256xf32>
    %c256_i32 = arith.constant 256 : i32
    %24 = arith.muli %arg1, %c256_i32 : i32
    %25 = tpu.iota {dimensions = array<i32: 1>} : vector<1x256xi32>
    %26 = vector.broadcast %24 : i32 to vector<1x256xi32>
    %27 = arith.addi %26, %25 : vector<1x256xi32>
    %c256_i32_9 = arith.constant 256 : i32
    %28 = vector.broadcast %c256_i32_9 : i32 to vector<1x256xi32>
    %29 = arith.cmpi slt, %27, %28 : vector<1x256xi32>
    %cst_10 = arith.constant 0.000000e+00 : f32
    %30 = vector.broadcast %cst_10 : f32 to vector<1x256xf32>
    %31 = arith.select %29, %23, %30 : vector<1x256xi1>, vector<1x256xf32>
    %c0_11 = arith.constant 0 : index
    %c0_12 = arith.constant 0 : index
    %c0_13 = arith.constant 0 : index
    %32 = vector.load %arg4[%c0_11, %c0_12, %c0_13] : memref<1x1x1xf32, #tpu.memory_space<vmem>>, vector<1x1x1xf32>
    %33 = vector.shape_cast %31 : vector<1x256xf32> to vector<1x1x256xf32>
    %cst_14 = arith.constant dense<0.000000e+00> : vector<1xf32>
    %34 = vector.multi_reduction <add>, %33, %cst_14 [1, 2] : vector<1x1x256xf32> to vector<1xf32>
    %35 = vector.shape_cast %34 : vector<1xf32> to vector<1x1x1xf32>
    %36 = vector.extract %35[0, 0, 0] : f32 from vector<1x1x1xf32>
    %37 = vector.broadcast %36 : f32 to vector<1x1x1xf32>
    %38 = arith.addf %32, %37 : vector<1x1x1xf32>
    %c0_15 = arith.constant 0 : index
    %c0_16 = arith.constant 0 : index
    %c0_17 = arith.constant 0 : index
    %39 = vector.load %arg4[%c0_15, %c0_16, %c0_17] : memref<1x1x1xf32, #tpu.memory_space<vmem>>, vector<1x1x1xf32>
    tpu.vector_store %arg4[%c0_15, %c0_16, %c0_17], %38 {strides = array<i32>} : memref<1x1x1xf32, #tpu.memory_space<vmem>>, vector<1x1x1xf32>,
    return
  }
  func.func @transform_0(%arg0: i32, %arg1: i32) -> (i32, i32, i32) {
    %c0_i32 = arith.constant 0 : i32
    %c0_i32_0 = arith.constant 0 : i32
    return %arg0, %c0_i32, %arg1 : i32, i32, i32
  }
  func.func @transform_1(%arg0: i32, %arg1: i32) -> (i32, i32, i32) {
    %c0_i32 = arith.constant 0 : i32
    %c0_i32_0 = arith.constant 0 : i32
    return %arg0, %c0_i32, %arg1 : i32, i32, i32
  }
  func.func @transform_2(%arg0: i32, %arg1: i32) -> (i32, i32, i32) {
    %c0_i32 = arith.constant 0 : i32
    %c0_i32_0 = arith.constant 0 : i32
    %c0_i32_1 = arith.constant 0 : i32
    return %arg0, %c0_i32, %c0_i32_0 : i32, i32, i32
  }
}

</mosaic_0001>

<bundles_post_ra>
// kernel: tpu_custom_call.1
= control target key start
LH: loop header
LB: loop body
LE: loop exit
PB: predicated region body
PF: predicated region fallthrough
CT: control target
= control target key end

     0   :  { %7 = vsyncpa [#allocation3], 0  ;;  %s782_s0 = inlined_call_operand.hbm [shape: f32[2,4,256], index: 0, kind: input, shape index: {}]   ;;  %s783_s1 = inlined_call_operand.hbm [shape: s32[2,1,256], index: 1, kind: input, shape index: {}]   ;;  %s784_s2 = inlined_call_operand.vmem [shape: f32[2,1,1], index: 2, kind: output, shape index: {}]  }
   0x1   :  { %9 = vsyncpa [#allocation3 + $0x1], 0 }
   0x2   :  { %10 = vsyncpa [#allocation5], 0 }
   0x3   :  { %12 = vsyncpa [#allocation5 + $0x1], 0  ;;  %s646_s9 = smov 0   ;;  %s648_s10 = smov 0  }
   0x4   :  { %s650_s11 = smov 0   ;;  %s652_s12 = smov 0  }
   0x5   :  { %s654_s13 = smov 0   ;;  %s656_s14 = smov 0  }
   0x6 LB: > { %s429_s15 = sadd.s32 4294967295, %s626_s14   ;;  %s30_s16 = sadd.s32 1, %s622_s13  ;;  %s626_s14 = sphi %s656_s14, %s18_s14   ;;  %s622_s13 = sphi %s654_s13, %s793_s13   ;;  %s618_s12 = sphi %s652_s12, %s792_s12   ;;  %s614_s11 = sphi %s650_s11, %s791_s11   ;;  %s610_s10 = sphi %s648_s10, %s790_s10   ;;  %s606_s9 = sphi %s646_s9, %s789_s9  }
   0x7   : > { %p32_p0 = scmp.ge.s32.totalorder %s30_s16, 2  ;;  %s39_s17 = sadd.s32 1, %s614_s11 }
   0x8   : > { %p46_p1 = scmp.ne.s32.totalorder %s614_s11, %s610_s10  ;;  %p47_p2 = scmp.eq.s32.totalorder %s626_s14, 0 }
   0x9   : > { %s795_s16 = smov (%p32_p0, %s30_s16), 0  ;;  %p52_p4 = scmp.ne.s32.totalorder %s610_s10, %s606_s9 }
   0xa   : > { %p682_p3 = por %p47_p2, %p46_p1  ;;  %s34_s19 = ssub.s32 %s622_s13, %s795_s16 }
   0xb   : > { %p53_p5 = scmp.eq.s32.totalorder %s429_s15, 0  ;;  %p37_p6 = scmp.eq.s32.totalorder %s34_s19, 0 }
   0xc   : > { %p459_p8 = scmp.lt.s32.totalorder %s626_s14, 2  ;;  %s698_s22 = sand.u32 1, %s614_s11  }
   0xd   : > { %p689_p7 = por %p53_p5, %p52_p4  ;;  %s444_s23 = sshll.u32 %s622_s13, 7 }
   0xe   : > { %s695_s21 = scalar_select %p37_p6, %s614_s11, %s39_s17  }
   0xf   : > { %s433_s24 = sshll.u32 %s698_s22, 3  ;;  %s142_s27 = scalar_lea.hbm %s782_s0, %s444_s23 }
  0x10   : > { %s134_s28 = scalar_lea.vmem [#allocation2], %s433_s24  ;;  %p707_p9 = pnand %p459_p8, %p682_p3 }
  0x11   : > { %s144_s29 = sshll.u32 %s134_s28, 4  ;;  %p439_p10 = scmp.ge.s32.totalorder %s626_s14, 1  ;;  %s145_s29 = int_to_ptr.vmem [resolvable:$true] %s144_s29 }
  0x12   : > { %p170_p11 = scmp.lt.s32.totalorder %s626_s14, 3  ;;  %s131_s3 = scalar_lea.sflag [#allocation3], %s698_s22 }
  0x13   : > { %p518_p12 = pneg %p707_p9  ;;  %s529_s4 = scalar_lea.vmem %s145_s29, 128 }
  0x14   : > { %p530_p13 = scmp.ne.s32.totalorder %s145_s29, %s529_s4  ;;  %s628_s5 = smov [#allocation2]  }
  0x15   : > { %s534_s6 = sshll.u32 %s628_s5, 4  ;;  %s535_s6 = int_to_ptr.vmem [resolvable:$false] %s534_s6 }
  0x16   : > { %p532_p0 = pnand %p530_p13, %p518_p12  ;;  %s536_s7 = scalar_lea.vmem %s535_s6, 256 }
  0x17   : > { %p537_p2 = scmp.lt.s32.totalorder %s145_s29, %s535_s6  ;;  %p538_p3 = scmp.lt.s32.totalorder %s536_s7, %s529_s4 }
  0x18   : > { %p533_p1 = pneg %p532_p0 }
  0x19   : > { %p539_p4 = por %p538_p3, %p537_p2 }
  0x1b   : > { %p540_p5 = pnand %p539_p4, %p533_p1 }
  0x1d   : > { %543 = shalt.err (!%p540_p5)
}
  0x1e   : > { %455 = dma.hbm_to_vmem [thread:$0]  (!%p707_p9), %s142_s27, 128, %s145_s29, %s131_s3  }
  0x1f   : > { %p725_p6 = pnand %p439_p10, %p170_p11  ;;  %s436_s9 = sshll.u32 %s698_s22, 1 }
  0x20   : > { %s445_s15 = sshll.u32 %s622_s13, 5  ;;  %s155_s23 = scalar_lea.vmem [#allocation4], %s436_s9 }
  0x21   : > { %s163_s19 = scalar_lea.hbm %s783_s1, %s445_s15  ;;  %s165_s24 = sshll.u32 %s155_s23, 4  ;;  %s166_s24 = int_to_ptr.vmem [resolvable:$true] %s165_s24 }
  0x22   : > { %s152_s25 = scalar_lea.sflag [#allocation5], %s698_s22  ;;  %s557_s26 = scalar_lea.vmem %s166_s24, 32 }
  0x23   : > { %p558_p8 = scmp.ne.s32.totalorder %s166_s24, %s557_s26  ;;  %s629_s27 = smov [#allocation4]  }
  0x24   : > { %s562_s28 = sshll.u32 %s629_s27, 4  ;;  %s563_s28 = int_to_ptr.vmem [resolvable:$false] %s562_s28 }
  0x25   : > { %p560_p13 = pnand %p558_p8, %p518_p12  ;;  %s564_s29 = scalar_lea.vmem %s563_s28, 64 }
  0x26   : > { %p565_p10 = scmp.lt.s32.totalorder %s166_s24, %s563_s28  ;;  %p566_p11 = scmp.lt.s32.totalorder %s564_s29, %s557_s26 }
  0x27   : > { %p561_p0 = pneg %p560_p13 }
  0x28   : > { %p567_p1 = por %p566_p11, %p565_p10 }
  0x2a   : > { %p568_p2 = pnand %p567_p1, %p561_p0 }
  0x2c   : > { %571 = shalt.err (!%p568_p2)
}
  0x2d   : > { %458 = dma.hbm_to_vmem [thread:$0]  (!%p707_p9), %s163_s19, 32, %s166_s24, %s152_s25  }
  0x2e   : > { %174 = sbr.rel (%p725_p6) target bundleno = 333 (0x14d), region = 28  ;;  %s176_s22 = sand.u32 (!%p725_p6), 1, %s610_s10  }
  0x2f   : > { %s440_s3 = sshll.u32 (!%p725_p6), %s176_s22, 3  ;;  %s177_s4 = scalar_lea.sflag (!%p725_p6), [#allocation3], %s176_s22 }
  0x30   : > { %s180_s5 = scalar_lea.vmem (!%p725_p6), [#allocation2], %s440_s3 }
  0x33   : > { %597 = dma.done.wait (%p689_p7), %s177_s4, 128  }
  0x34   : > { %599 = vsyncadd (%p689_p7), %s177_s4, 4294967168  ;;  %s441_s6 = sshll.u32 %s176_s22, 1  ;;  %s186_s7 = scalar_lea.sflag [#allocation5], %s176_s22 }
  0x35   : > { %s189_s9 = scalar_lea.vmem [#allocation4], %s441_s6 }
  0x36   : > { %601 = dma.done.wait (%p689_p7), %s186_s7, 32  }
  0x37   : > { %603 = vsyncadd (%p689_p7), %s186_s7, 4294967264  ;;  %vm229_vm0 = vcmask 1043456   ;;  %v224_v0 = vld [vmem:[%s180_s5] sm:$0xff]  ;;  %v274_v18 = vlaneseq  ;;  %v225_v22 = vld [vmem:[%s189_s9] sm:$0x3]  ;;  %vm316_vm3 = vcmask 1040384  }
  0x38   : > { %v227_v1 = vcombine.high %v224_v0, %v224_v0  ;;  %v230_v2 = vsel %vm229_vm0, %v224_v0, -inf  ;;  %p215_p7 = scmp.lt.s32.totalorder %s618_s12, 1  ;;  %vm222_vm4 = vcmask 0  }
  0x39   : > { %v231_v3 = vrot.slane %v230_v2, 4  ;;  %v275_v20 = vshrl.u32 %v274_v18, 7 }
  0x3a   : > { %v237_v4 = vsel %vm229_vm0, %v227_v1, -inf  ;;  %s797_s12 = smov (!%p215_p7, %s618_s12), 1 }
  0x3b   : > { %v232_v5 = vmax.f32 %v230_v2, %v231_v3  ;;  %v238_v6 = vrot.slane %v237_v4, 4  ;;  %v278_v21 = vsub.s32 0, %v275_v20  ;;  %v282_v23 = vsub.s32 1, %v275_v20  ;;  %s217_s8 = scalar_lea.vmem %s784_s2, %s797_s12 }
  0x3d   : > { %v233_v7 = vrot.slane %v232_v5, 2  ;;  %v239_v8 = vmax.f32 %v237_v4, %v238_v6  ;;  %v279_v24 = vrot.slane %v225_v22, %v278_v21  ;;  %v283_v25 = vrot.slane %v225_v22, %v282_v23 }
  0x3f   : > { %v234_v9 = vmax.f32 %v232_v5, %v233_v7  ;;  %v240_v10 = vrot.slane %v239_v8, 2  ;;  %vm284_vm1 = vcmp.eq.s32.totalorder %v275_v20, %v279_v24  ;;  %vm285_vm2 = vcmp.eq.s32.totalorder %v275_v20, %v283_v25 }
  0x40   : > { %v286_v30 = vsel %vm284_vm1, %v224_v0, 0.0  ;;  %v287_v34 = vsel %vm285_vm2, %v227_v1, 0.0  ;;  %v630_v5 = vmov 0.0  }
  0x41   : > { %v235_v11 = vrot.slane %v234_v9, 1  ;;  %v241_v12 = vmax.f32 %v239_v8, %v240_v10  ;;  %v288_v35 = vsel %vm229_vm0, %v286_v30, 0.0  ;;  %v295_v38 = vsel %vm229_vm0, %v287_v34, 0.0  ;;  %223 = vst.msk [vmem:[%s217_s8] sm:$0x1] %vm222_vm4, %v630_v5 }
  0x42   : > { %v289_v41 = vrot.slane %v288_v35, 4  ;;  %v296_v44 = vrot.slane %v295_v38, 4 }
  0x43   : > { %v236_v13 = vmax.f32 %v234_v9, %v235_v11  ;;  %v242_v14 = vrot.slane %v241_v12, 1 }
  0x44   : > { %v290_v47 = vadd.f32 %v289_v41, %v288_v35  ;;  %v297_v49 = vadd.f32 %v296_v44, %v295_v38 }
  0x45   : > { %v243_v15 = vmax.f32 %v241_v12, %v242_v14 }
  0x46   : > { %v291_v50 = vrot.slane %v290_v47, 2  ;;  %v298_v51 = vrot.slane %v297_v49, 2 }
  0x47   : > { %v246_v16 = vcombine.low %v236_v13, %v243_v15 }
  0x48   : > { %v292_v52 = vadd.f32 %v291_v50, %v290_v47  ;;  %v299_v53 = vadd.f32 %v298_v51, %v297_v49 }
  0x49   : > { %v248_v17 = vsub.f32 %v224_v0, %v246_v16 }
  0x4a   : > { %v293_v54 = vrot.slane %v292_v52, 1  ;;  %v300_v55 = vrot.slane %v299_v53, 1 }
  0x4b   : > { %v249_v19 = vmul.f32 1.442695, %v248_v17 }
  0x4c   : > { %v294_v58 = vadd.f32 %v293_v54, %v292_v52  ;;  %v301_v62 = vadd.f32 %v300_v55, %v299_v53 }
  0x4d   : > { %510 = vpow2.f32 %v249_v19 }
  0x5a   : > { %v511_v26 = vpop.eup %510 }
  0x5b   : > { %v252_v27 = vcombine.high %v511_v26, %v511_v26  ;;  %v254_v28 = vsel %vm229_vm0, %v511_v26, 0.0 }
  0x5c   : > { %v255_v29 = vrot.slane %v254_v28, 4 }
  0x5d   : > { %v261_v31 = vsel %vm229_vm0, %v252_v27, 0.0 }
  0x5e   : > { %v256_v32 = vadd.f32 %v255_v29, %v254_v28  ;;  %v262_v33 = vrot.slane %v261_v31, 4 }
  0x60   : > { %v257_v36 = vrot.slane %v256_v32, 2  ;;  %v263_v37 = vadd.f32 %v262_v33, %v261_v31 }
  0x62   : > { %v258_v39 = vadd.f32 %v257_v36, %v256_v32  ;;  %v264_v40 = vrot.slane %v263_v37, 2 }
  0x64   : > { %v259_v42 = vrot.slane %v258_v39, 1  ;;  %v265_v43 = vadd.f32 %v264_v40, %v263_v37 }
  0x66   : > { %v260_v45 = vadd.f32 %v259_v42, %v258_v39  ;;  %v266_v46 = vrot.slane %v265_v43, 1 }
  0x68   : > { %v267_v48 = vadd.f32 %v266_v46, %v265_v43  ;;  %512 = vlog2.f32 %v260_v45 }
  0x6a   : > { %514 = vlog2.f32 %v267_v48 }
  0x75   : > { %v513_v56 = vpop.eup %512 }
  0x76   : > { %v269_v57 = vmul.f32 0.6931472, %v513_v56 }
  0x77   : > { %v515_v59 = vpop.eup %514 }
  0x78   : > { %v271_v60 = vmul.f32 0.6931472, %v515_v59  ;;  %v272_v61 = vadd.f32 %v269_v57, %v236_v13  ;;  %v315_v13 = vld [vmem:[%s217_s8] sm:$0x1] }
  0x7a   : > { %v273_v63 = vadd.f32 %v271_v60, %v243_v15  ;;  %v302_v0 = vsub.f32 %v272_v61, %v294_v58 }
  0x7c   : > { %v303_v1 = vsub.f32 %v273_v63, %v301_v62  ;;  %v317_v2 = vsel %vm316_vm3, %v302_v0, 0.0 }
  0x7e   : > { %v318_v3 = vsel %vm316_vm3, %v303_v1, 0.0 }
  0x7f   : > { %v319_v4 = vadd.f32 %v318_v3, %v317_v2 }
  0x81   : > { %320 = vadd.xlane.f32.xlu0 %v319_v4 }
 0x10a   : > { %v321_v6 = vpop.xlane.xlu0 %320 }
 0x10b   : > { %v322_v7 = vrot.slane %v321_v6, 4 }
 0x10d   : > { %v323_v8 = vadd.f32 %v322_v7, %v321_v6 }
 0x10f   : > { %v324_v9 = vrot.slane %v323_v8, 2 }
 0x111   : > { %v325_v10 = vadd.f32 %v324_v9, %v323_v8 }
 0x113   : > { %v326_v11 = vrot.slane %v325_v10, 1 }
 0x115   : > { %v327_v12 = vadd.f32 %v326_v11, %v325_v10 }
 0x117   : > { %446 = vpush %v327_v12 }
 0x148   : > { %s447_s15 = spop %446 }
 0x149   : > { %v329_v14 = vstv %s447_s15 }
 0x14a   : > { %v330_v15 = vadd.f32 %v329_v14, %v315_v13 }
 0x14c   : > { %332 = vst.msk [vmem:[%s217_s8] sm:$0x1] %vm222_vm4, %v330_v15 }
 0x14d PF: > { %s18_s14 = sadd.s32 1, %s626_s14   ;;  %s789_s9 = smov %s610_s10 }
 0x14e   : > { %p15_p9 = scmp.ge.s32.totalorder %s18_s14, 4   ;;  %s790_s10 = smov %s614_s11 }
 0x14f   : > { %s791_s11 = smov %s695_s21  ;;  %s792_s12 = smov %s622_s13 }
 0x150   : > { %s793_s13 = smov %s795_s16  ;;  %17 = sbr.rel (!%p15_p9) target bundleno = 6 (0x6), region = 85 }
 0x155   :  { %350 = vsyncpa [#allocation3], 1 }
 0x156   :  { %352 = vsyncpa [#allocation3 + $0x1], 1 }
 0x157   :  { %353 = vsyncpa [#allocation5], 1 }
 0x158   :  { %355 = vsyncpa [#allocation5 + $0x1], 1 }

</bundles_post_ra>
